<compile_context>
chip_gen: v5e
topology: v5e:2x2
jax: 0.10.0
libtpu: 0.0.40
codegen_flags: <defaults>
</compile_context>

<pallas_src>
import jax
import jax.numpy as jnp
from jax.experimental import pallas as pl
from jax.experimental.pallas import tpu as pltpu

_LANE = 128
_MAX_BLOCK_COLS = 2048                   # lane width cap for very wide F
_TARGET_TILE_BYTES = 4 * 1024 * 1024     # ~4 MiB per x tile
_TARGET_ROW_BLOCKS = 8                   # aim for >= 8 row blocks (pipeline + megacore)


def _round_up(a: int, b: int) -> int:
    return (a + b - 1) // b * b


def _sublane(dtype) -> int:
    # Sublane packing per dtype width (f32: 8 rows/vreg, bf16: 16, int8/fp8: 32).
    return {4: 8, 2: 16, 1: 32}.get(jnp.dtype(dtype).itemsize, 8)


def _standardize_kernel(x_ref, scale_ref, shift_ref, o_ref):
    # Fused affine: (x - mean)/std == x * (1/std) + (-mean/std).
    # Compute in f32 (important for bf16 inputs; v5e has no bf16 VPU path).
    x = x_ref[...].astype(jnp.float32)
    o_ref[...] = (x * scale_ref[...] + shift_ref[...]).astype(o_ref.dtype)


def _standardize_2d(x2: jax.Array, scale_row: jax.Array, shift_row: jax.Array) -> jax.Array:
    """Apply per-column affine to x2 [R, C]; scale_row/shift_row are [1, C] f32."""
    R, C = x2.shape
    dtype = x2.dtype
    itemsize = jnp.dtype(dtype).itemsize
    sub = _sublane(dtype)

    # ---- column (lane) blocking ------------------------------------------
    # Block last dim must be a multiple of 128 OR equal the full array width.
    if C > _MAX_BLOCK_COLS:
        block_cols = _MAX_BLOCK_COLS         # multiple of 128; trailing ragged
    else:                                    # block (if any) is masked by Pallas
        block_cols = C                       # full width — always legal
    grid_cols = pl.cdiv(C, block_cols)

    # ---- row (sublane) blocking --------------------------------------------
    # VMEM footprint uses the lane-padded width (a narrow C still occupies full
    # 128-lane tiles in VMEM), so budget against that.
    vmem_cols = _round_up(block_cols, _LANE)
    rows_budget = max(sub, (_TARGET_TILE_BYTES // (vmem_cols * itemsize)) // sub * sub)
    rows_split = _round_up(pl.cdiv(R, _TARGET_ROW_BLOCKS), sub)
    block_rows = max(sub, min(rows_budget, rows_split, _round_up(R, sub)))
    grid_rows = pl.cdiv(R, block_rows)       # ragged last row block is masked

    # Grid: columns outer, rows inner -> scale/shift block index is constant
    # across the inner loop, so their repeated DMA is elided.
    grid = (grid_cols, grid_rows)

    return pl.pallas_call(
        _standardize_kernel,
        out_shape=jax.ShapeDtypeStruct((R, C), dtype),
        grid=grid,
        in_specs=[
            pl.BlockSpec((block_rows, block_cols), lambda j, i: (i, j)),  # x tile
            pl.BlockSpec((1, block_cols), lambda j, i: (0, j)),           # scale row
            pl.BlockSpec((1, block_cols), lambda j, i: (0, j)),           # shift row
        ],
        out_specs=pl.BlockSpec((block_rows, block_cols), lambda j, i: (i, j)),
        compiler_params=pltpu.CompilerParams(
            dimension_semantics=("parallel", "parallel")),
    )(x2, scale_row, shift_row)


def _apply(x: jax.Array, scale: jax.Array, shift: jax.Array) -> jax.Array:
    """x: [N, F]; scale/shift: [F] f32 with scale = 1/std, shift = -mean/std."""
    N, F = x.shape

    # Narrow-feature lane-dense fold: groups of rows are merged so the kernel's
    # last dim is a full 128 lanes (unmasked vst).  Only taken when the reshape
    # is a free bitcast (N divisible by the fold factor) — never pad/slice x.
    if 0 < F < _LANE and _LANE % F == 0:
        reps = _LANE // F
        if N > 0 and N % reps == 0:
            x2 = x.reshape(N // reps, _LANE)
            out2 = _standardize_2d(
                x2,
                jnp.tile(scale, reps)[None, :],
                jnp.tile(shift, reps)[None, :],
            )
            return out2.reshape(N, F)

    # General path: x is passed unpadded; ragged row / lane edge blocks are
    # masked by Pallas.  For narrow F this means masked partial stores, which
    # is much cheaper than the 2 extra full-array HBM passes a pad+slice costs.
    return _standardize_2d(x, scale[None, :], shift[None, :])


def standardize(x: jax.Array, mean: jax.Array, std: jax.Array) -> jax.Array:
    """Apply (x - mean) / std row-wise over node features.

    x:    [N, F] float array
    mean: [F]    float array
    std:  [F]    float array
    """
    N, F = x.shape
    assert mean.shape == (F,) and std.shape == (F,)
    scale = 1.0 / std.astype(jnp.float32)
    shift = -mean.astype(jnp.float32) * scale
    return _apply(x, scale, shift)


class Standardize:
    """JAX/Pallas equivalent of the PyTorch Standardize module."""

    def __init__(self, mean: jax.Array, std: jax.Array):
        # Constant registered buffers: precompute the fused affine parameters
        # once, in f32, so __call__ does no per-call scalar work.
        mean = jnp.asarray(mean, dtype=jnp.float32)
        std = jnp.asarray(std, dtype=jnp.float32)
        self.mean = mean
        self.std = std
        self._scale = 1.0 / std
        self._shift = -mean * self._scale

    def __call__(self, x: jax.Array) -> jax.Array:
        # TODO(synk): PyG `Data.clone()` graph-container semantics are not
        # representable here; only the node-feature transform is computed.
        return _apply(x, self._scale, self._shift)


if __name__ == "__main__":
    key = jax.random.PRNGKey(0)
    k_x, k_m, k_s, k_x2, k_x3, k_x4 = jax.random.split(key, 6)

    # Case 1: narrow feature dim, N divisible by fold factor (lane-dense fold).
    N, F = 64, 32
    x = jax.random.normal(k_x, (N, F), dtype=jnp.float32)
    mean = jax.random.normal(k_m, (F,), dtype=jnp.float32) * 0.5
    std = jax.random.uniform(k_s, (F,), dtype=jnp.float32, minval=0.5, maxval=2.0)

    module = Standardize(mean, std)
    out = jax.block_until_ready(module(x))
    ref = (x - mean[None, :]) / std[None, :]
    assert out.shape == (N, F) and out.dtype == x.dtype
    assert jnp.allclose(out, ref, atol=1e-5, rtol=1e-5)

    # Case 2: wide feature dim + ragged row count (masked trailing row block).
    N2, F2 = 200, 256
    x_wide = jax.random.normal(k_x2, (N2, F2), dtype=jnp.float32)
    mean2 = jnp.linspace(-1.0, 1.0, F2, dtype=jnp.float32)
    std2 = jnp.linspace(0.5, 2.0, F2, dtype=jnp.float32)
    out2 = jax.block_until_ready(standardize(x_wide, mean2, std2))
    ref2 = (x_wide - mean2[None, :]) / std2[None, :]
    assert out2.shape == (N2, F2)
    assert jnp.allclose(out2, ref2, atol=1e-5, rtol=1e-5)

    # Case 3: narrow F with N NOT divisible by the fold factor (general path,
    # full-width <128-lane block with masked stores; no pad/slice of x).
    N3, F3 = 67, 32
    x_rag = jax.random.normal(k_x3, (N3, F3), dtype=jnp.float32)
    out3 = jax.block_until_ready(standardize(x_rag, mean, std))
    ref3 = (x_rag - mean[None, :]) / std[None, :]
    assert out3.shape == (N3, F3)
    assert jnp.allclose(out3, ref3, atol=1e-5, rtol=1e-5)

    # Case 4: bf16 input (f32 compute path inside the kernel).
    N4, F4 = 48, 128
    x_bf = jax.random.normal(k_x4, (N4, F4), dtype=jnp.float32)
    mean4 = jnp.linspace(-0.5, 0.5, F4, dtype=jnp.float32)
    std4 = jnp.linspace(0.75, 1.5, F4, dtype=jnp.float32)
    out4 = jax.block_until_ready(standardize(x_bf.astype(jnp.bfloat16), mean4, std4))
    ref4 = (x_bf - mean4[None, :]) / std4[None, :]
    assert out4.shape == (N4, F4) and out4.dtype == jnp.bfloat16
    assert jnp.allclose(out4.astype(jnp.float32), ref4, atol=3e-2, rtol=3e-2)

    print("KERNEL_OK")
</pallas_src>

<mosaic_0001>
module attributes {stable_mosaic.version = 11 : i64} {
  func.func @_standardize_kernel(%arg0: i32, %arg1: i32, %arg2: memref<8x128xf32, #tpu.memory_space<vmem>>, %arg3: memref<1x128xf32, #tpu.memory_space<vmem>>, %arg4: memref<1x128xf32, #tpu.memory_space<vmem>>, %arg5: memref<8x128xf32, #tpu.memory_space<vmem>>) attributes {dimension_semantics = [#tpu.dimension_semantics<parallel>, #tpu.dimension_semantics<parallel>], iteration_bounds = array<i64: 1, 2>, scalar_prefetch = 0 : i64, scratch_operands = 0 : i64, tpu.core_type = #tpu.core_type<tc>, window_params = [{transform_indices = @transform_0, window_bounds = array<i64: 8, 128>}, {transform_indices = @transform_1, window_bounds = array<i64: 1, 128>}, {transform_indices = @transform_2, window_bounds = array<i64: 1, 128>}, {transform_indices = @transform_3, window_bounds = array<i64: 8, 128>}]} {
    %c0 = arith.constant 0 : index
    %c0_0 = arith.constant 0 : index
    %0 = vector.load %arg2[%c0, %c0_0] : memref<8x128xf32, #tpu.memory_space<vmem>>, vector<8x128xf32>
    %c0_1 = arith.constant 0 : index
    %c0_2 = arith.constant 0 : index
    %1 = vector.load %arg3[%c0_1, %c0_2] : memref<1x128xf32, #tpu.memory_space<vmem>>, vector<1x128xf32>
    %2 = vector.broadcast %1 : vector<1x128xf32> to vector<8x128xf32>
    %3 = arith.mulf %0, %2 : vector<8x128xf32>
    %c0_3 = arith.constant 0 : index
    %c0_4 = arith.constant 0 : index
    %4 = vector.load %arg4[%c0_3, %c0_4] : memref<1x128xf32, #tpu.memory_space<vmem>>, vector<1x128xf32>
    %5 = vector.broadcast %4 : vector<1x128xf32> to vector<8x128xf32>
    %6 = arith.addf %3, %5 : vector<8x128xf32>
    %c0_5 = arith.constant 0 : index
    %c0_6 = arith.constant 0 : index
    %7 = vector.load %arg5[%c0_5, %c0_6] : memref<8x128xf32, #tpu.memory_space<vmem>>, vector<8x128xf32>
    tpu.vector_store %arg5[%c0_5, %c0_6], %6 {strides = array<i32>} : memref<8x128xf32, #tpu.memory_space<vmem>>, vector<8x128xf32>,
    return
  }
  func.func @transform_0(%arg0: i32, %arg1: i32) -> (i32, i32) {
    %c0_i32 = arith.constant 0 : i32
    return %arg1, %arg0 : i32, i32
  }
  func.func @transform_1(%arg0: i32, %arg1: i32) -> (i32, i32) {
    %c0_i32 = arith.constant 0 : i32
    %c0_i32_0 = arith.constant 0 : i32
    return %c0_i32, %arg0 : i32, i32
  }
  func.func @transform_2(%arg0: i32, %arg1: i32) -> (i32, i32) {
    %c0_i32 = arith.constant 0 : i32
    %c0_i32_0 = arith.constant 0 : i32
    return %c0_i32, %arg0 : i32, i32
  }
  func.func @transform_3(%arg0: i32, %arg1: i32) -> (i32, i32) {
    %c0_i32 = arith.constant 0 : i32
    return %arg1, %arg0 : i32, i32
  }
}

</mosaic_0001>

<bundles_post_ra>
// kernel: tpu_custom_call.1
= control target key start
LH: loop header
LB: loop body
LE: loop exit
PB: predicated region body
PF: predicated region fallthrough
CT: control target
= control target key end

     0   :  { %8 = vsyncpa [#allocation3], 0  ;;  %s784_s0 = inlined_call_operand.hbm [shape: f32[16,128], index: 0, kind: input, shape index: {}]   ;;  %s785_s1 = inlined_call_operand.hbm [shape: f32[1,128], index: 1, kind: input, shape index: {}]   ;;  %s786_s2 = inlined_call_operand.vmem [shape: f32[1,128], index: 2, kind: input, shape index: {}]   ;;  %s787_s3 = inlined_call_operand.hbm [shape: f32[16,128], index: 3, kind: output, shape index: {}]  }
   0x1   :  { %10 = vsyncpa [#allocation3 + $0x1], 0 }
   0x2   :  { %11 = vsyncpa [#allocation6], 0 }
   0x3   :  { %12 = vsyncpa [#allocation4], 0 }
   0x4   :  { %14 = vsyncpa [#allocation4 + $0x1], 0  ;;  %s632_s12 = smov 0   ;;  %s634_s13 = smov 0  }
   0x5   :  { %s636_s14 = smov 0   ;;  %s638_s15 = smov 0  }
   0x6   :  { %s640_s16 = smov 0   ;;  %s642_s17 = smov 0  }
   0x7 LB: > { %s372_s18 = sadd.s32 4294967295, %s609_s17   ;;  %s373_s19 = sadd.s32 4294967294, %s609_s17   ;;  %s609_s17 = sphi %s642_s17, %s20_s17   ;;  %s605_s16 = sphi %s640_s16, %s799_s16   ;;  %s601_s15 = sphi %s638_s15, %s798_s15   ;;  %s597_s14 = sphi %s636_s14, %s797_s14   ;;  %s593_s13 = sphi %s634_s13, %s796_s13   ;;  %s589_s12 = sphi %s632_s12, %s795_s12  }
   0x8   : > { %p54_p0 = scmp.ne.s32.totalorder %s593_s13, %s589_s12  ;;  %p666_p1 = scmp.eq.s32.totalorder %s372_s18, 0 }
   0x9   : > { %p670_p2 = scmp.eq.s32.totalorder %s372_s18, 1  ;;  %p138_p3 = scmp.eq.s32.totalorder %s373_s19, 1 }
   0xa   : > { %p676_p4 = por %p666_p1, %p54_p0  ;;  %p374_p5 = scmp.ge.s32.totalorder %s609_s17, 1 }
   0xb   : > { %p681_p6 = por %p138_p3, %p54_p0  ;;  %p145_p7 = scmp.lt.s32.totalorder %s609_s17, 3 }
   0xc   : > { %s158_s26 = sshll.u32 %s785_s1, 4  ;;  %p377_p9 = scmp.ge.s32.totalorder %s609_s17, 2  ;;  %s159_s26 = int_to_ptr.hbm [resolvable:$true] %s158_s26 }
   0xd   : > { %p689_p8 = pnand %p374_p5, %p145_p7  ;;  %s611_s28 = smov [#allocation5]  }
   0xe   : > { %s160_s29 = sshll.u32 %s611_s28, 4  ;;  %s29_s30 = sadd.s32 1, %s605_s16  ;;  %s161_s29 = int_to_ptr.vmem [resolvable:$true] %s160_s29 }
   0xf   : > { %p396_p10 = pneg %p689_p8  ;;  %p30_p12 = scmp.ge.s32.totalorder %s29_s30, 2 }
  0x10   : > { %s41_s4 = sadd.s32 1, %s597_s14  ;;  %p48_p13 = scmp.ne.s32.totalorder %s597_s14, %s593_s13 }
  0x11   : > { %p397_p11 = pnand %p396_p10, %p666_p1  ;;  %p49_p0 = scmp.eq.s32.totalorder %s609_s17, 0 }
  0x12   : > { %s801_s30 = smov (%p30_p12, %s29_s30), 0  ;;  %p711_p5 = por %p670_p2, %p48_p13 }
  0x13   : > { %399 = dma.hbm_to_vmem [thread:$0]  (!%p397_p11), %s159_s26, 16, %s161_s29, [#allocation6]  }
  0x14   : > { %p705_p3 = por %p49_p0, %p48_p13  ;;  %s36_s7 = ssub.s32 %s605_s16, %s801_s30 }
  0x15   : > { %p409_p7 = scmp.lt.s32.totalorder %s609_s17, 2  ;;  %p39_p10 = scmp.eq.s32.totalorder %s36_s7, 0 }
  0x16   : > { %s177_s8 = sand.u32 1, %s597_s14   ;;  %s379_s11 = sshll.u32 %s605_s16, 3 }
  0x17   : > { %s378_s9 = sshll.u32 %s177_s8, 3  ;;  %s186_s24 = scalar_lea.hbm %s784_s0, %s379_s11 }
  0x18   : > { %s720_s10 = scalar_select %p39_p10, %s597_s14, %s41_s4  }
  0x19   : > { %s181_s25 = scalar_lea.vmem [#allocation2], %s378_s9  ;;  %s188_s21 = sshll.u32 %s186_s24, 4  ;;  %s189_s21 = int_to_ptr.hbm [resolvable:$true] %s188_s21 }
  0x1a   : > { %s190_s26 = sshll.u32 %s181_s25, 4  ;;  %p401_p2 = pnand %p409_p7, %p705_p3  ;;  %s191_s26 = int_to_ptr.vmem [resolvable:$true] %s190_s26 }
  0x1b   : > { %s178_s28 = scalar_lea.sflag [#allocation3], %s177_s8  ;;  %199 = sbr.rel (%p689_p8) target bundleno = 50 (0x32), region = 32 }
  0x1c   : > { %403 = dma.hbm_to_vmem [thread:$0]  (!%p401_p2), %s189_s21, 128, %s191_s26, %s178_s28  }
  0x1d   : > { %s731_s29 = sand.u32 (!%p689_p8), 1, %s593_s13  }
  0x1e   : > { %s381_s4 = sshll.u32 (!%p689_p8), %s731_s29, 3  ;;  %s202_s7 = scalar_lea.sflag (!%p689_p8), [#allocation3], %s731_s29 }
  0x1f   : > { %s205_s9 = scalar_lea.vmem (!%p689_p8), [#allocation2], %s381_s4 }
  0x20   : > { %576 = dma.done.wait (%p676_p4), %s202_s7, 128  }
  0x21   : > { %578 = vsyncadd (%p676_p4), %s202_s7, 4294967168 }
  0x22   : > { %580 = dma.done.wait (%p666_p1), [#allocation6], 16  }
  0x23   : > { %582 = vsyncadd (%p666_p1), [#allocation6], 4294967280  ;;  %s385_s27 = sshll.u32 %s601_s15, 3  ;;  %v240_v0 = vld [vmem:[%s205_s9] sm:$0xff]  ;;  %v461_v1 = vld [vmem:[#allocation5] ss:$0 sm:$0xff] }
  0x24   : > { %s264_s11 = scalar_lea.hbm %s787_s3, %s385_s27  ;;  %v462_v2 = vld [vmem:[%s786_s2] ss:$0 sm:$0xff]  ;;  %s236_s22 = scalar_lea.vmem [#allocation7], %s381_s4  ;;  %v245_v3 = vmul.f32 %v461_v1, %v240_v0 }
  0x25   : > { %s266_s24 = sshll.u32 %s236_s22, 4  ;;  %s268_s25 = sshll.u32 %s264_s11, 4  ;;  %s267_s24 = int_to_ptr.vmem [resolvable:$true] %s266_s24  ;;  %s269_s25 = int_to_ptr.hbm [resolvable:$true] %s268_s25 }
  0x26   : > { %v250_v4 = vadd.f32 %v462_v2, %v245_v3  ;;  %s253_s15 = scalar_lea.sflag [#allocation4], %s731_s29  ;;  %s537_s20 = sshra.s32 %s269_s25, 4  ;;  %s538_s20 = int_to_ptr.hbm [resolvable:$true] %s537_s20 }
  0x27   : > { %s539_s26 = scalar_lea.hbm %s538_s20, 8  ;;  %s543_s7 = scalar_lea.hbm %s787_s3, 16 }
  0x28   : > { %251 = vst [vmem:[%s236_s22] sm:$0xff] %v250_v4  ;;  %p540_p1 = scmp.ne.s32.totalorder %s538_s20, %s539_s26  ;;  %p544_p11 = scmp.lt.s32.totalorder %s538_s20, %s787_s3 }
  0x29   : > { %p545_p12 = scmp.lt.s32.totalorder %s543_s7, %s539_s26 }
  0x2a   : > { %p541_p4 = pnand %p540_p1, %p711_p5 }
  0x2b   : > { %p546_p13 = por %p545_p12, %p544_p11 }
  0x2c   : > { %p542_p8 = pneg %p541_p4 }
  0x2e   : > { %p547_p0 = pnand %p546_p13, %p542_p8 }
  0x30   : > { %550 = shalt.err (!%p547_p0)
}
  0x31   : > { %394 = dma.vmem_to_hbm [thread:$0]  (%p711_p5), %s267_s24, 128, %s269_s25, %s253_s15  }
  0x32 PF: > { %s280_s29 = sand.u32 1, %s589_s12   ;;  %p405_p3 = pnand %p377_p9, %p681_p6 }
  0x33   : > { %s281_s27 = scalar_lea.sflag [#allocation4], %s280_s29 }
  0x34   : > { %p406_p7 = pneg %p405_p3 }
  0x36   : > { %584 = dma.done.wait (%p406_p7), %s281_s27, 128  }
  0x37   : > { %586 = vsyncadd (%p406_p7), %s281_s27, 4294967168  ;;  %s20_s17 = sadd.s32 1, %s609_s17   ;;  %s795_s12 = smov %s593_s13 }
  0x38   : > { %p17_p10 = scmp.ge.s32.totalorder %s20_s17, 4   ;;  %s796_s13 = smov %s597_s14 }
  0x39   : > { %s797_s14 = smov %s720_s10  ;;  %s798_s15 = smov %s605_s16 }
  0x3a   : > { %s799_s16 = smov %s801_s30  ;;  %19 = sbr.rel (!%p17_p10) target bundleno = 7 (0x7), region = 85 }
  0x3f   :  { %287 = vsyncpa [#allocation3], 1 }
  0x40   :  { %289 = vsyncpa [#allocation3 + $0x1], 1 }
  0x41   :  { %290 = vsyncpa [#allocation6], 1 }
  0x42   :  { %291 = vsyncpa [#allocation4], 1 }
  0x43   :  { %293 = vsyncpa [#allocation4 + $0x1], 1 }

</bundles_post_ra>
